<compile_context>
chip_gen: v7x
topology: tpu7x:2x2x1
jax: 0.10.0
libtpu: 0.0.40
codegen_flags: <defaults>
</compile_context>

<pallas_src>
import jax
import jax.numpy as jnp
from jax.experimental import pallas as pl
from jax.experimental.pallas import tpu as pltpu


def _round_up(x, m):
    return ((x + m - 1) // m) * m


def _vmem_budget_bytes():
    """Usable per-core VMEM (generation-aware; conservative fallback = v7x 64 MiB)."""
    try:
        cap = pltpu.get_tpu_info().vmem_capacity_bytes
    except Exception:
        cap = 64 * 1024 * 1024
    return max(int(cap * 0.7), 32 * 1024 * 1024)


# ---------------------------------------------------------------------------
# Path 1 (stride == 1): direct shifted-dot conv, no im2col materialization.
# ---------------------------------------------------------------------------
def _make_direct_kernel(tap_offsets, oc_tile):
    def kernel(w_ref, x_ref, o_ref):
        # w_ref: (KH*KW, OC_pad, C)  bf16, whole array resident in VMEM
        # x_ref: (1, C, S_buf)       bf16, flattened zero-padded image (one batch)
        # o_ref: (1, oc_tile, L)     L multiple of 128 -> unmasked lane-dense store
        L = o_ref.shape[2]
        oc0 = pl.multiple_of(pl.program_id(1) * oc_tile, oc_tile)
        acc = jnp.zeros((oc_tile, L), jnp.float32)
        for tap, off in enumerate(tap_offsets):      # static unroll, KH*KW taps
            w_tap = w_ref[tap, pl.ds(oc0, oc_tile), :]   # (oc_tile, C)
            x_sh = x_ref[0, :, off:off + L]              # (C, L) shifted VMEM view
            acc += jnp.dot(w_tap, x_sh, preferred_element_type=jnp.float32)
        o_ref[0] = jnp.maximum(acc, 0.0).astype(o_ref.dtype)   # fused ReLU
    return kernel


def _conv_relu_direct(x, w, padding, out_dtype, compute_dtype):
    N, C, H, W = x.shape
    OC, _, KH, KW = w.shape
    H_pad, W_row = H + 2 * padding, W + 2 * padding
    OH, OW = H_pad - KH + 1, W_row - KW + 1            # stride == 1

    # Output computed on the padded W_row-wide grid (garbage columns sliced off
    # in the wrapper); rounded to a lane-dense multiple of 128.
    L = _round_up(OH * W_row, 128)
    S_need = L + (KH - 1) * W_row + (KW - 1)           # max flat index read + 1
    S_buf = _round_up(max(S_need, H_pad * W_row), 128)

    oc_tile = min(_round_up(OC, 8), 128)
    OC_pad = _round_up(OC, oc_tile)
    noc = OC_pad // oc_tile

    cd_bytes = jnp.dtype(compute_dtype).itemsize
    out_bytes = jnp.dtype(out_dtype).itemsize
    need = (KH * KW * OC_pad * C * cd_bytes      # resident weights (single copy)
            + 2 * C * S_buf * cd_bytes           # double-buffered input slab
            + 2 * oc_tile * L * out_bytes        # double-buffered output tile
            + oc_tile * L * 4)                   # f32 accumulator
    budget = _vmem_budget_bytes()
    if need > budget:
        return None                              # caller falls back to im2col path

    # bf16 cast fused with the (mandatory) pad pass — no f32 patch blowup.
    x_p = jnp.pad(x.astype(compute_dtype),
                  ((0, 0), (0, 0), (padding, padding), (padding, padding)))
    x_flat = x_p.reshape(N, C, H_pad * W_row)
    x_flat = jnp.pad(x_flat, ((0, 0), (0, 0), (0, S_buf - H_pad * W_row)))

    # Per-tap (OC, C) weight matrices; OC zero-padded to the tile.
    w_taps = jnp.transpose(w.astype(compute_dtype), (2, 3, 0, 1)).reshape(KH * KW, OC, C)
    if OC_pad != OC:
        w_taps = jnp.pad(w_taps, ((0, 0), (0, OC_pad - OC), (0, 0)))

    tap_offsets = tuple(kh * W_row + kw for kh in range(KH) for kw in range(KW))

    out = pl.pallas_call(
        _make_direct_kernel(tap_offsets, oc_tile),
        out_shape=jax.ShapeDtypeStruct((N, OC_pad, L), out_dtype),
        grid=(N, noc),
        in_specs=[
            # Whole weight array resident in VMEM: one copy, never re-DMA'd.
            pl.BlockSpec(memory_space=pltpu.MemorySpace.VMEM),
            # One flattened padded image per batch; constant across the OC axis
            # so it is only DMA'd when the batch index changes.
            pl.BlockSpec((1, C, S_buf), lambda n, oc: (n, 0, 0)),
        ],
        out_specs=pl.BlockSpec((1, oc_tile, L), lambda n, oc: (n, oc, 0)),
        compiler_params=pltpu.CompilerParams(
            dimension_semantics=("parallel", "parallel"),
            vmem_limit_bytes=int(min(max(2 * need, 32 * 1024 * 1024), budget)),
        ),
    )(w_taps, x_flat)

    out = out[:, :OC, :OH * W_row].reshape(N, OC, OH, W_row)[:, :, :, :OW]
    return out


# ---------------------------------------------------------------------------
# Path 2 (stride > 1 or VMEM overflow): bf16 im2col + single MXU matmul.
# ---------------------------------------------------------------------------
def _im2col_matmul_relu_kernel(w_ref, p_ref, o_ref):
    # w_ref: (OC_pad, K) bf16, resident in VMEM.  p_ref: (1, K, T).  o_ref: (1, OC_pad, T)
    acc = jnp.dot(w_ref[...], p_ref[0], preferred_element_type=jnp.float32)
    o_ref[0] = jnp.maximum(acc, 0.0).astype(o_ref.dtype)


def _conv_relu_im2col(x, w, stride, padding, out_dtype, compute_dtype):
    N, C, H, W = x.shape
    OC, _, KH, KW = w.shape
    OH = (H + 2 * padding - KH) // stride + 1
    OW = (W + 2 * padding - KW) // stride + 1
    OHW, K = OH * OW, C * KH * KW

    # Cast BEFORE the KH*KW patch blowup so the im2col array lives in HBM as bf16.
    x_p = jnp.pad(x.astype(compute_dtype),
                  ((0, 0), (0, 0), (padding, padding), (padding, padding)))
    cols = []
    for kh in range(KH):
        for kw in range(KW):
            cols.append(x_p[:, :,
                            kh:kh + (OH - 1) * stride + 1:stride,
                            kw:kw + (OW - 1) * stride + 1:stride])
    patches = jnp.stack(cols, axis=2).reshape(N, K, OHW)    # K ordered (c, kh, kw)

    OC_pad = _round_up(OC, 8)
    w_flat = w.astype(compute_dtype).reshape(OC, K)          # same (c,kh,kw) ordering
    if OC_pad != OC:
        w_flat = jnp.pad(w_flat, ((0, OC_pad - OC), (0, 0)))

    cd_bytes = jnp.dtype(compute_dtype).itemsize
    out_bytes = jnp.dtype(out_dtype).itemsize
    budget = _vmem_budget_bytes()
    # per-step bytes ~ 2*K*T*cd + 2*OC*T*out + OC*T*4 (acc) + OC*K*cd  ->  solve T.
    t_cap = (budget - OC_pad * K * cd_bytes) // (2 * K * cd_bytes + 2 * OC_pad * out_bytes + OC_pad * 4)
    t_cap = max(128, (t_cap // 128) * 128)
    T = min(_round_up(OHW, 128), t_cap, 16384)
    OHW_pad = _round_up(OHW, T)
    if OHW_pad != OHW:
        patches = jnp.pad(patches, ((0, 0), (0, 0), (0, OHW_pad - OHW)))

    out = pl.pallas_call(
        _im2col_matmul_relu_kernel,
        out_shape=jax.ShapeDtypeStruct((N, OC_pad, OHW_pad), out_dtype),
        grid=(N, OHW_pad // T),
        in_specs=[
            pl.BlockSpec(memory_space=pltpu.MemorySpace.VMEM),   # weights, resident
            pl.BlockSpec((1, K, T), lambda n, t: (n, 0, t)),     # patch tile
        ],
        out_specs=pl.BlockSpec((1, OC_pad, T), lambda n, t: (n, 0, t)),
        compiler_params=pltpu.CompilerParams(
            dimension_semantics=("parallel", "parallel"),
            vmem_limit_bytes=int(budget),
        ),
    )(w_flat, patches)

    return out[:, :OC, :OHW].reshape(N, OC, OH, OW)


# ---------------------------------------------------------------------------
# Public entry point: Conv2d(bias=False, stride, padding) + ReLU (NCHW / OIHW).
# ---------------------------------------------------------------------------
def basic_conv2d(x, w, *, stride=1, padding=0,
                 compute_dtype=jnp.bfloat16, out_dtype=None):
    """Matches torch BasicConv2d forward. out_dtype=None -> x.dtype (set
    jnp.bfloat16 to halve output writeback when the consumer allows it)."""
    out_dtype = x.dtype if out_dtype is None else out_dtype
    if stride == 1:
        out = _conv_relu_direct(x, w, padding, out_dtype, compute_dtype)
        if out is not None:
            return out
    # TODO(synk): a direct (no-im2col) kernel for stride>1 would need per-phase
    # strided gathers; use the bf16-materialized im2col matmul path instead.
    return _conv_relu_im2col(x, w, stride, padding, out_dtype, compute_dtype)


if __name__ == "__main__":
    # BasicConv2d(inputchannel=4, outputchannel=8, kernel_size=3, ...)
    N, C, H, W = 2, 4, 16, 16
    OC, KH, KW = 8, 3, 3

    key = jax.random.PRNGKey(0)
    kx, kw_ = jax.random.split(key)
    x = jax.random.normal(kx, (N, C, H, W), dtype=jnp.float32)
    fan_in = C * KH * KW
    w = jax.random.normal(kw_, (OC, C, KH, KW), dtype=jnp.float32) * (2.0 / fan_in) ** 0.5

    def ref(x, w, stride, padding):
        r = jax.lax.conv_general_dilated(
            x, w, window_strides=(stride, stride),
            padding=((padding, padding), (padding, padding)),
            dimension_numbers=("NCHW", "OIHW", "NCHW"))
        return jnp.maximum(r, 0.0)

    # stride=1 / padding=1: direct shifted-dot path (no im2col in HBM).
    out1 = jax.block_until_ready(basic_conv2d(x, w, stride=1, padding=1))
    r1 = ref(x, w, 1, 1)
    assert out1.shape == r1.shape
    assert jnp.allclose(out1, r1, atol=2e-2, rtol=2e-2)   # bf16 MXU inputs, f32 acc

    # stride=2 / padding=1: bf16 im2col fallback path.
    out2 = jax.block_until_ready(basic_conv2d(x, w, stride=2, padding=1))
    r2 = ref(x, w, 2, 1)
    assert out2.shape == r2.shape
    assert jnp.allclose(out2, r2, atol=2e-2, rtol=2e-2)

    print("KERNEL_OK")
</pallas_src>

<mosaic_0001>
module attributes {stable_mosaic.version = 11 : i64} {
  func.func @kernel(%arg0: i32, %arg1: i32, %arg2: memref<9x8x4xbf16, #tpu.memory_space<vmem>>, %arg3: memref<1x4x512xbf16, #tpu.memory_space<vmem>>, %arg4: memref<1x8x384xf32, #tpu.memory_space<vmem>>) attributes {dimension_semantics = [#tpu.dimension_semantics<parallel>, #tpu.dimension_semantics<parallel>], iteration_bounds = array<i64: 2, 1>, scalar_prefetch = 0 : i64, scratch_operands = 0 : i64, tpu.core_type = #tpu.core_type<tc>, window_params = [{pipeline_mode = #tpu.pipeline_mode<synchronous>, transform_indices = @transform_0, window_bounds = array<i64: 9, 8, 4>}, {transform_indices = @transform_1, window_bounds = array<i64: 1, 4, 512>}, {transform_indices = @transform_2, window_bounds = array<i64: 1, 8, 384>}]} {
    %c8_i32 = arith.constant 8 : i32
    %0 = arith.muli %arg1, %c8_i32 : i32
    %1 = tpu.assume_multiple %0, 8 : i32
    %cst = arith.constant 0.000000e+00 : f32
    %2 = vector.broadcast %cst : f32 to vector<8x384xf32>
    %c0 = arith.constant 0 : index
    %3 = arith.index_cast %1 : i32 to index
    %c0_0 = arith.constant 0 : index
    %4 = vector.load %arg2[%c0, %3, %c0_0] : memref<9x8x4xbf16, #tpu.memory_space<vmem>>, vector<1x8x4xbf16>
    %5 = vector.shape_cast %4 : vector<1x8x4xbf16> to vector<8x4xbf16>
    %c0_1 = arith.constant 0 : index
    %c0_2 = arith.constant 0 : index
    %c0_3 = arith.constant 0 : index
    %6 = vector.load %arg3[%c0_1, %c0_2, %c0_3] : memref<1x4x512xbf16, #tpu.memory_space<vmem>>, vector<1x4x384xbf16>
    %7 = vector.shape_cast %6 : vector<1x4x384xbf16> to vector<4x384xbf16>
    %cst_4 = arith.constant dense<0.000000e+00> : vector<8x384xf32>
    %8 = tpu.matmul %5, %7, %cst_4 {dimension_numbers = #tpu.dot_dimension_numbers<[1], [0], [0], [1], [0, 0, 1, 1], [], []>} : vector<8x4xbf16>, vector<4x384xbf16>, vector<8x384xf32> -> vector<8x384xf32>
    %9 = arith.addf %2, %8 : vector<8x384xf32>
    %c1 = arith.constant 1 : index
    %10 = arith.index_cast %1 : i32 to index
    %c0_5 = arith.constant 0 : index
    %11 = vector.load %arg2[%c1, %10, %c0_5] : memref<9x8x4xbf16, #tpu.memory_space<vmem>>, vector<1x8x4xbf16>
    %12 = vector.shape_cast %11 : vector<1x8x4xbf16> to vector<8x4xbf16>
    %c0_6 = arith.constant 0 : index
    %c0_7 = arith.constant 0 : index
    %c1_8 = arith.constant 1 : index
    %13 = vector.load %arg3[%c0_6, %c0_7, %c1_8] : memref<1x4x512xbf16, #tpu.memory_space<vmem>>, vector<1x4x384xbf16>
    %14 = vector.shape_cast %13 : vector<1x4x384xbf16> to vector<4x384xbf16>
    %cst_9 = arith.constant dense<0.000000e+00> : vector<8x384xf32>
    %15 = tpu.matmul %12, %14, %cst_9 {dimension_numbers = #tpu.dot_dimension_numbers<[1], [0], [0], [1], [0, 0, 1, 1], [], []>} : vector<8x4xbf16>, vector<4x384xbf16>, vector<8x384xf32> -> vector<8x384xf32>
    %16 = arith.addf %9, %15 : vector<8x384xf32>
    %c2 = arith.constant 2 : index
    %17 = arith.index_cast %1 : i32 to index
    %c0_10 = arith.constant 0 : index
    %18 = vector.load %arg2[%c2, %17, %c0_10] : memref<9x8x4xbf16, #tpu.memory_space<vmem>>, vector<1x8x4xbf16>
    %19 = vector.shape_cast %18 : vector<1x8x4xbf16> to vector<8x4xbf16>
    %c0_11 = arith.constant 0 : index
    %c0_12 = arith.constant 0 : index
    %c2_13 = arith.constant 2 : index
    %20 = vector.load %arg3[%c0_11, %c0_12, %c2_13] : memref<1x4x512xbf16, #tpu.memory_space<vmem>>, vector<1x4x384xbf16>
    %21 = vector.shape_cast %20 : vector<1x4x384xbf16> to vector<4x384xbf16>
    %cst_14 = arith.constant dense<0.000000e+00> : vector<8x384xf32>
    %22 = tpu.matmul %19, %21, %cst_14 {dimension_numbers = #tpu.dot_dimension_numbers<[1], [0], [0], [1], [0, 0, 1, 1], [], []>} : vector<8x4xbf16>, vector<4x384xbf16>, vector<8x384xf32> -> vector<8x384xf32>
    %23 = arith.addf %16, %22 : vector<8x384xf32>
    %c3 = arith.constant 3 : index
    %24 = arith.index_cast %1 : i32 to index
    %c0_15 = arith.constant 0 : index
    %25 = vector.load %arg2[%c3, %24, %c0_15] : memref<9x8x4xbf16, #tpu.memory_space<vmem>>, vector<1x8x4xbf16>
    %26 = vector.shape_cast %25 : vector<1x8x4xbf16> to vector<8x4xbf16>
    %c0_16 = arith.constant 0 : index
    %c0_17 = arith.constant 0 : index
    %c18 = arith.constant 18 : index
    %27 = vector.load %arg3[%c0_16, %c0_17, %c18] : memref<1x4x512xbf16, #tpu.memory_space<vmem>>, vector<1x4x384xbf16>
    %28 = vector.shape_cast %27 : vector<1x4x384xbf16> to vector<4x384xbf16>
    %cst_18 = arith.constant dense<0.000000e+00> : vector<8x384xf32>
    %29 = tpu.matmul %26, %28, %cst_18 {dimension_numbers = #tpu.dot_dimension_numbers<[1], [0], [0], [1], [0, 0, 1, 1], [], []>} : vector<8x4xbf16>, vector<4x384xbf16>, vector<8x384xf32> -> vector<8x384xf32>
    %30 = arith.addf %23, %29 : vector<8x384xf32>
    %c4 = arith.constant 4 : index
    %31 = arith.index_cast %1 : i32 to index
    %c0_19 = arith.constant 0 : index
    %32 = vector.load %arg2[%c4, %31, %c0_19] : memref<9x8x4xbf16, #tpu.memory_space<vmem>>, vector<1x8x4xbf16>
    %33 = vector.shape_cast %32 : vector<1x8x4xbf16> to vector<8x4xbf16>
    %c0_20 = arith.constant 0 : index
    %c0_21 = arith.constant 0 : index
    %c19 = arith.constant 19 : index
    %34 = vector.load %arg3[%c0_20, %c0_21, %c19] : memref<1x4x512xbf16, #tpu.memory_space<vmem>>, vector<1x4x384xbf16>
    %35 = vector.shape_cast %34 : vector<1x4x384xbf16> to vector<4x384xbf16>
    %cst_22 = arith.constant dense<0.000000e+00> : vector<8x384xf32>
    %36 = tpu.matmul %33, %35, %cst_22 {dimension_numbers = #tpu.dot_dimension_numbers<[1], [0], [0], [1], [0, 0, 1, 1], [], []>} : vector<8x4xbf16>, vector<4x384xbf16>, vector<8x384xf32> -> vector<8x384xf32>
    %37 = arith.addf %30, %36 : vector<8x384xf32>
    %c5 = arith.constant 5 : index
    %38 = arith.index_cast %1 : i32 to index
    %c0_23 = arith.constant 0 : index
    %39 = vector.load %arg2[%c5, %38, %c0_23] : memref<9x8x4xbf16, #tpu.memory_space<vmem>>, vector<1x8x4xbf16>
    %40 = vector.shape_cast %39 : vector<1x8x4xbf16> to vector<8x4xbf16>
    %c0_24 = arith.constant 0 : index
    %c0_25 = arith.constant 0 : index
    %c20 = arith.constant 20 : index
    %41 = vector.load %arg3[%c0_24, %c0_25, %c20] : memref<1x4x512xbf16, #tpu.memory_space<vmem>>, vector<1x4x384xbf16>
    %42 = vector.shape_cast %41 : vector<1x4x384xbf16> to vector<4x384xbf16>
    %cst_26 = arith.constant dense<0.000000e+00> : vector<8x384xf32>
    %43 = tpu.matmul %40, %42, %cst_26 {dimension_numbers = #tpu.dot_dimension_numbers<[1], [0], [0], [1], [0, 0, 1, 1], [], []>} : vector<8x4xbf16>, vector<4x384xbf16>, vector<8x384xf32> -> vector<8x384xf32>
    %44 = arith.addf %37, %43 : vector<8x384xf32>
    %c6 = arith.constant 6 : index
    %45 = arith.index_cast %1 : i32 to index
    %c0_27 = arith.constant 0 : index
    %46 = vector.load %arg2[%c6, %45, %c0_27] : memref<9x8x4xbf16, #tpu.memory_space<vmem>>, vector<1x8x4xbf16>
    %47 = vector.shape_cast %46 : vector<1x8x4xbf16> to vector<8x4xbf16>
    %c0_28 = arith.constant 0 : index
    %c0_29 = arith.constant 0 : index
    %c36 = arith.constant 36 : index
    %48 = vector.load %arg3[%c0_28, %c0_29, %c36] : memref<1x4x512xbf16, #tpu.memory_space<vmem>>, vector<1x4x384xbf16>
    %49 = vector.shape_cast %48 : vector<1x4x384xbf16> to vector<4x384xbf16>
    %cst_30 = arith.constant dense<0.000000e+00> : vector<8x384xf32>
    %50 = tpu.matmul %47, %49, %cst_30 {dimension_numbers = #tpu.dot_dimension_numbers<[1], [0], [0], [1], [0, 0, 1, 1], [], []>} : vector<8x4xbf16>, vector<4x384xbf16>, vector<8x384xf32> -> vector<8x384xf32>
    %51 = arith.addf %44, %50 : vector<8x384xf32>
    %c7 = arith.constant 7 : index
    %52 = arith.index_cast %1 : i32 to index
    %c0_31 = arith.constant 0 : index
    %53 = vector.load %arg2[%c7, %52, %c0_31] : memref<9x8x4xbf16, #tpu.memory_space<vmem>>, vector<1x8x4xbf16>
    %54 = vector.shape_cast %53 : vector<1x8x4xbf16> to vector<8x4xbf16>
    %c0_32 = arith.constant 0 : index
    %c0_33 = arith.constant 0 : index
    %c37 = arith.constant 37 : index
    %55 = vector.load %arg3[%c0_32, %c0_33, %c37] : memref<1x4x512xbf16, #tpu.memory_space<vmem>>, vector<1x4x384xbf16>
    %56 = vector.shape_cast %55 : vector<1x4x384xbf16> to vector<4x384xbf16>
    %cst_34 = arith.constant dense<0.000000e+00> : vector<8x384xf32>
    %57 = tpu.matmul %54, %56, %cst_34 {dimension_numbers = #tpu.dot_dimension_numbers<[1], [0], [0], [1], [0, 0, 1, 1], [], []>} : vector<8x4xbf16>, vector<4x384xbf16>, vector<8x384xf32> -> vector<8x384xf32>
    %58 = arith.addf %51, %57 : vector<8x384xf32>
    %c8 = arith.constant 8 : index
    %59 = arith.index_cast %1 : i32 to index
    %c0_35 = arith.constant 0 : index
    %60 = vector.load %arg2[%c8, %59, %c0_35] : memref<9x8x4xbf16, #tpu.memory_space<vmem>>, vector<1x8x4xbf16>
    %61 = vector.shape_cast %60 : vector<1x8x4xbf16> to vector<8x4xbf16>
    %c0_36 = arith.constant 0 : index
    %c0_37 = arith.constant 0 : index
    %c38 = arith.constant 38 : index
    %62 = vector.load %arg3[%c0_36, %c0_37, %c38] : memref<1x4x512xbf16, #tpu.memory_space<vmem>>, vector<1x4x384xbf16>
    %63 = vector.shape_cast %62 : vector<1x4x384xbf16> to vector<4x384xbf16>
    %cst_38 = arith.constant dense<0.000000e+00> : vector<8x384xf32>
    %64 = tpu.matmul %61, %63, %cst_38 {dimension_numbers = #tpu.dot_dimension_numbers<[1], [0], [0], [1], [0, 0, 1, 1], [], []>} : vector<8x4xbf16>, vector<4x384xbf16>, vector<8x384xf32> -> vector<8x384xf32>
    %65 = arith.addf %58, %64 : vector<8x384xf32>
    %cst_39 = arith.constant 0.000000e+00 : f32
    %66 = vector.broadcast %cst_39 : f32 to vector<8x384xf32>
    %67 = arith.maximumf %65, %66 : vector<8x384xf32>
    %c0_40 = arith.constant 0 : index
    %c0_41 = arith.constant 0 : index
    %c0_42 = arith.constant 0 : index
    %68 = vector.load %arg4[%c0_40, %c0_41, %c0_42] : memref<1x8x384xf32, #tpu.memory_space<vmem>>, vector<1x8x384xf32>
    %69 = vector.shape_cast %68 : vector<1x8x384xf32> to vector<8x384xf32>
    %70 = vector.shape_cast %67 : vector<8x384xf32> to vector<1x8x384xf32>
    tpu.vector_store %arg4[%c0_40, %c0_41, %c0_42], %70 {strides = array<i32>} : memref<1x8x384xf32, #tpu.memory_space<vmem>>, vector<1x8x384xf32>,
    return
  }
  func.func @transform_0(%arg0: i32, %arg1: i32) -> (i32, i32, i32) {
    %c0_i32 = arith.constant 0 : i32
    %c0_i32_0 = arith.constant 0 : i32
    %c0_i32_1 = arith.constant 0 : i32
    %c0_i32_2 = arith.constant 0 : i32
    return %c0_i32, %c0_i32_0, %c0_i32_1 : i32, i32, i32
  }
  func.func @transform_1(%arg0: i32, %arg1: i32) -> (i32, i32, i32) {
    %c0_i32 = arith.constant 0 : i32
    %c0_i32_0 = arith.constant 0 : i32
    %c0_i32_1 = arith.constant 0 : i32
    return %arg0, %c0_i32, %c0_i32_0 : i32, i32, i32
  }
  func.func @transform_2(%arg0: i32, %arg1: i32) -> (i32, i32, i32) {
    %c0_i32 = arith.constant 0 : i32
    %c0_i32_0 = arith.constant 0 : i32
    return %arg0, %arg1, %c0_i32 : i32, i32, i32
  }
}

</mosaic_0001>

<bundles_post_ra>
// kernel: tpu_custom_call.1
= control target key start
LH: loop header
LB: loop body
LE: loop exit
PB: predicated region body
PF: predicated region fallthrough
CT: control target
= control target key end

     0   :  { %7 = vsyncpa [#allocation3], 0  ;;  %s2047_s0 = inlined_call_operand.vmem [shape: bf16[9,8,4], index: 0, kind: input, shape index: {}]   ;;  %s2048_s1 = inlined_call_operand.vmem [shape: bf16[2,4,512], index: 1, kind: input, shape index: {}]   ;;  %s2049_s2 = inlined_call_operand.hbm [shape: f32[2,8,384], index: 2, kind: output, shape index: {}]  }
   0x1   :  { %9 = vsyncpa [#allocation3 + $0x1], 0  ;;  %s1801_s9 = smov 0   ;;  %s1803_s10 = smov 0  }
   0x2   :  { %s1805_s11 = smov 0   ;;  %s1807_s12 = smov 0  }
   0x3   :  { %s1809_s13 = smov 0   ;;  %s1811_s14 = smov 0  }
   0x4 LB: > { %s1440_s15 = sadd.s32 4294967295, %s1771_s14   ;;  %s1441_s16 = sadd.s32 4294967294, %s1771_s14   ;;  %s1771_s14 = sphi %s1811_s14, %s15_s14   ;;  %s1767_s13 = sphi %s1809_s13, %s2056_s13   ;;  %s1763_s12 = sphi %s1807_s12, %s2055_s12   ;;  %s1759_s11 = sphi %s1805_s11, %s2054_s11   ;;  %s1755_s10 = sphi %s1803_s10, %s2053_s10   ;;  %s1751_s9 = sphi %s1801_s9, %s2052_s9  }
   0x5   : > { %s27_s17 = sadd.s32 1, %s1767_s13  ;;  %s83_s18 = sadd.s32 1, %s1759_s11 }
   0x6   : > { %p29_p0 = scmp.ge.s32.totalorder %s27_s17, 2  ;;  %p93_p1 = scmp.ne.s32.totalorder %s1759_s11, %s1755_s10 }
   0x7   : > { %p94_p2 = scmp.eq.s32.totalorder %s1440_s15, 1  ;;  %p99_p3 = scmp.ne.s32.totalorder %s1755_s10, %s1751_s9 }
   0x8   : > { %s2058_s17 = smov (%p29_p0, %s27_s17), 0  ;;  %p100_p5 = scmp.eq.s32.totalorder %s1441_s16, 1 }
   0x9   : > { %p1841_p4 = por %p94_p2, %p93_p1  ;;  %s78_s20 = ssub.s32 %s1767_s13, %s2058_s17 }
   0xa   : > { %p1444_p6 = scmp.ge.s32.totalorder %s1771_s14, 1  ;;  %p81_p7 = scmp.eq.s32.totalorder %s78_s20, 0 }
   0xb   : > { %p1848_p8 = por %p100_p5, %p99_p3  ;;  %p129_p9 = scmp.lt.s32.totalorder %s1771_s14, 3 }
   0xc   : > { %s1854_s22 = scalar_select %p81_p7, %s1759_s11, %s83_s18  }
   0xd   : > { %p130_p10 = pnand %p1444_p6, %p129_p9 }
   0xe   : > { %p151_p11 = scmp.lt.s32.totalorder (!%p130_p10), %s1763_s12, 1  ;;  %v174_v0 = vlaneseq (!%p130_p10)  ;;  %v1773_v1 = vmov (!%p130_p10), 1983009808   ;;  %v1774_v5 = vmov (!%p130_p10), 0.0   ;;  %v1775_v6 = vmov (!%p130_p10), 0   ;;  %s1777_s28 = smov (!%p130_p10), 127  }
   0xf   : > { %133 = sbr.rel (%p130_p10) target bundleno = 479 (0x1df), region = 28  ;;  %v172_v2 = vunpack.c.l.s4 (!%p130_p10), %v1773_v1  ;;  %1504 = vmatprep.subr.bf16.mxu1 (!%p130_p10), %v1774_v5  ;;  %245 = vmatprep.mubr.bf16.mxu0 (!%p130_p10), %v1775_v6  ;;  %vm1776_vm0 = vmmov (!%p130_p10), 0   ;;  %s1778_s29 = smov (!%p130_p10), 126   ;;  %vm195_vm1 = vcmask (!%p130_p10), 1039360   ;;  %vm203_vm2 = vcmask (!%p130_p10), 1041408  }
  0x10   : > { %v175_v3 = vshrl.u32 (!%p130_p10), %v174_v0, 7  ;;  %1506 = vmatprep.mubr.msk.bf16.mxu1 (!%p130_p10), %vm1776_vm0, %v1774_v5  ;;  %s1779_s30 = smov (!%p130_p10), 110   ;;  %s1780_s3 = smov (!%p130_p10), 109   ;;  %v1447_v27 = vld [vmem:[%s2047_s0 + $0x4] sm:$0xf] (!%p130_p10)  ;;  %vm199_vm3 = vcmask (!%p130_p10), 31744  }
  0x11   : > { %v173_v4 = vunpack.c.0.s8 (!%p130_p10), %v172_v2  ;;  %s1781_s4 = smov (!%p130_p10), 108   ;;  %s1782_s5 = smov (!%p130_p10), 92   ;;  %vm435_vm4 = vcmask (!%p130_p10), 1031168   ;;  %vm566_vm5 = vcmask (!%p130_p10), 900096   ;;  %v162_v40 = vld [vmem:[%s2047_s0] sm:$0xf] (!%p130_p10) }
  0x12   : > { %s1783_s6 = smov (!%p130_p10), 91   ;;  %s1784_s7 = smov (!%p130_p10), 90   ;;  %vm697_vm6 = vcmask (!%p130_p10), 891904   ;;  %v1454_v51 = vld [vmem:[%s2047_s0 + $0x8] sm:$0xf] (!%p130_p10)  ;;  %vm828_vm7 = vcmask (!%p130_p10), 883712  }
  0x13   : > { %v176_v7 = vsub.s32 (!%p130_p10), %v173_v4, %v175_v3  ;;  %v1458_v61 = vld [vmem:[%s2047_s0 + $0xc] sm:$0xf] (!%p130_p10)  ;;  %vm959_vm8 = vcmask (!%p130_p10), 752640   ;;  %vm1090_vm9 = vcmask (!%p130_p10), 744448   ;;  %vm1221_vm10 = vcmask (!%p130_p10), 736256   ;;  %s148_s8 = sand.u32 (!%p130_p10), 1, %s1755_s10  }
  0x14   : > { %s1622_s15 = smul.u32 (!%p130_p10), 24, %s148_s8 }
  0x15   : > { %s1623_s16 = smul.u32 (!%p130_p10), 384, %s1763_s12 }
  0x16   : > { %s152_s23 = scalar_select %p151_p11, %s1763_s12, 1 }
  0x17   : > { %s150_s18 = scalar_lea.vmem [#allocation2], %s1622_s15  ;;  %s2000_s25 = scalar_lea.hbm %s2049_s2, %s1623_s16 }
  0x18   : > { %s1485_s24 = sshll.u32 %s152_s23, 3  ;;  %s1344_s20 = sshll.u32 %s150_s18, 4  ;;  %s2002_s20 = int_to_ptr.vmem [resolvable:$true] %s1344_s20 }
  0x19   : > { %s155_s27 = scalar_lea.vmem %s2048_s1, %s1485_s24  ;;  %s1328_s12 = scalar_lea.sflag [#allocation3], %s148_s8 }
  0x1a   : > { %v168_v8 = vld [vmem:[%s155_s27] sm:$0xff]  ;;  %s1693_s26 = scalar_lea.vmem %s2002_s20, 384 }
  0x1b   : > { %v163_v9 = vld [vmem:[%s155_s27] sm:$0x3f]  ;;  %v177_v10 = vrot.slane %v168_v8, %v176_v7  ;;  %v170_v11 = vcombine.high %v168_v8, %v168_v8  ;;  %p1694_p12 = scmp.ne.s32.totalorder %s2002_s20, %s1693_s26  ;;  %s1785_s27 = smov [#allocation2]  }
  0x1c   : > { %v1865_v12 = vrot.slane %v163_v9, %v176_v7  ;;  %v295_v13 = vcombine.high %v163_v9, %v163_v9  ;;  %v1462_v9 = vld [vmem:[%s2047_s0 + $0x10] sm:$0xf] }
  0x1d   : > { %187 = vrot.lane.b32.xlu0 %v177_v10, %s1777_s28  ;;  %v185_v14 = vcombine.high %v177_v10, %v177_v10  ;;  %v184_v15 = vrot.slane %v170_v11, %v176_v7  ;;  %p1695_p13 = pnand %p1694_p12, %p1841_p4 }
  0x1e   : > { %v309_v16 = vrot.slane %v295_v13, %v176_v7  ;;  %v310_v21 = vcombine.high %v1865_v12, %v1865_v12  ;;  %v315_v29 = vsel %vm203_vm2, %v1865_v12, 0 }
  0x1f   : > { %191 = vrot.lane.b32.xlu1 %v184_v15, %s1777_s28  ;;  %v186_v17 = vcombine.high %v184_v15, %v184_v15  ;;  %p1696_p0 = pneg %p1695_p13 }
  0x20   : > { %v321_v31 = vsel %vm203_vm2, %v309_v16, 0 }
  0x21   : > { %189 = vrot.lane.b32.xlu0 %v185_v14, %s1777_s28 }
  0x23   : > { %193 = vrot.lane.b32.xlu1 %v186_v17, %s1777_s28  ;;  %s1697_s28 = sshll.u32 %s1785_s27, 4  ;;  %s1698_s28 = int_to_ptr.vmem [resolvable:$false] %s1697_s28 }
  0x24   : > { %p1700_p1 = scmp.lt.s32.totalorder %s2002_s20, %s1698_s28 }
  0x25   : > { %427 = vrot.lane.b32.xlu0 %v177_v10, %s1778_s29 }
  0x27   : > { %429 = vrot.lane.b32.xlu1 %v185_v14, %s1778_s29 }
  0x29   : > { %431 = vrot.lane.b32.xlu0 %v184_v15, %s1778_s29 }
  0x2b   : > { %433 = vrot.lane.b32.xlu1 %v186_v17, %s1778_s29  ;;  %s1699_s29 = scalar_lea.vmem %s1698_s28, 768 }
  0x2c   : > { %p1701_p2 = scmp.lt.s32.totalorder %s1699_s29, %s1693_s26 }
  0x2d   : > { %558 = vrot.lane.b32.xlu0 %v177_v10, %s1779_s30 }
  0x2e   : > { %p1702_p3 = por %p1701_p2, %p1700_p1 }
  0x2f   : > { %560 = vrot.lane.b32.xlu1 %v185_v14, %s1779_s30 }
  0x30   : > { %p1703_p5 = pnand %p1702_p3, %p1696_p0 }
  0x31   : > { %562 = vrot.lane.b32.xlu0 %v184_v15, %s1779_s30 }
  0x33   : > { %564 = vrot.lane.b32.xlu1 %v186_v17, %s1779_s30 }
  0x35   : > { %689 = vrot.lane.b32.xlu0 %v177_v10, %s1780_s3 }
  0x37   : > { %691 = vrot.lane.b32.xlu1 %v185_v14, %s1780_s3 }
  0x39   : > { %693 = vrot.lane.b32.xlu0 %v184_v15, %s1780_s3 }
  0x3b   : > { %695 = vrot.lane.b32.xlu1 %v186_v17, %s1780_s3 }
  0x3d   : > { %820 = vrot.lane.b32.xlu0 %v177_v10, %s1781_s4 }
  0x3f   : > { %822 = vrot.lane.b32.xlu1 %v185_v14, %s1781_s4 }
  0x41   : > { %824 = vrot.lane.b32.xlu0 %v184_v15, %s1781_s4 }
  0x43   : > { %826 = vrot.lane.b32.xlu1 %v186_v17, %s1781_s4 }
  0x45   : > { %951 = vrot.lane.b32.xlu0 %v177_v10, %s1782_s5 }
  0x47   : > { %953 = vrot.lane.b32.xlu1 %v185_v14, %s1782_s5 }
  0x49   : > { %955 = vrot.lane.b32.xlu0 %v184_v15, %s1782_s5 }
  0x4b   : > { %957 = vrot.lane.b32.xlu1 %v186_v17, %s1782_s5 }
  0x4d   : > { %1082 = vrot.lane.b32.xlu0 %v177_v10, %s1783_s6 }
  0x4f   : > { %1084 = vrot.lane.b32.xlu1 %v185_v14, %s1783_s6 }
  0x51   : > { %1086 = vrot.lane.b32.xlu0 %v184_v15, %s1783_s6 }
  0x53   : > { %1088 = vrot.lane.b32.xlu1 %v186_v17, %s1783_s6 }
  0x55   : > { %1213 = vrot.lane.b32.xlu0 %v177_v10, %s1784_s7 }
  0x57   : > { %1215 = vrot.lane.b32.xlu1 %v185_v14, %s1784_s7 }
  0x59   : > { %1217 = vrot.lane.b32.xlu0 %v184_v15, %s1784_s7 }
  0x5b   : > { %1219 = vrot.lane.b32.xlu1 %v186_v17, %s1784_s7 }
  0x8f   : > { %v188_v18 = vpop.permute.xlu0 %187 }
  0x91   : > { %v192_v19 = vpop.permute.xlu1 %191 }
  0x93   : > { %v190_v20 = vpop.permute.xlu0 %189 }
  0x94   : > { %v197_v22 = vsel %vm195_vm1, %v190_v20, %v192_v19  ;;  %v196_v23 = vsel %vm195_vm1, %v188_v18, %v190_v20 }
  0x95   : > { %1448 = vmatprep.subr.msk.bf16.mxu0 %vm203_vm2, %v197_v22  ;;  %v194_v24 = vpop.permute.xlu1 %193  ;;  %v205_v25 = vsel %vm203_vm2, %v196_v23, 0 }
  0x96   : > { %214 = vmatpush1.bf16.msra.mxu0 %v205_v25  ;;  %v198_v26 = vsel %vm195_vm1, %v192_v19, %v194_v24  ;;  %v1466_v19 = vld [vmem:[%s2047_s0 + $0x14] sm:$0xf] }
  0x97   : > { %v211_v28 = vsel %vm203_vm2, %v198_v26, 0  ;;  %1451 = vmatprep.subr.msk.bf16.mxu0 %vm203_vm2, %v310_v21  ;;  %v428_v30 = vpop.permute.xlu0 %427 }
  0x98   : > { %1505 = vmatpush3.bf16.msra.mxu1 %v211_v28 }
  0x99   : > { %1449 = vmatmul.mubr.msk.bf16.vlgmr.msra.gmra.mrb[0].mxu0 %vm199_vm3, %v1447_v27  ;;  %1510 = vmatprep.subr.bf16.mxu1 %v1774_v5  ;;  %v430_v32 = vpop.permute.xlu1 %429 }
  0x9a   : > { %324 = vmatpush1.bf16.msra.mxu0 %v315_v29  ;;  %355 = vmatprep.mubr.bf16.mxu0 %v1775_v6  ;;  %v436_v37 = vsel %vm435_vm4, %v428_v30, %v430_v32  ;;  %v1470_v29 = vld [vmem:[%s2047_s0 + $0x18] sm:$0xf] }
  0x9b   : > { %1507 = vmatmul.mubr.msk.bf16.vlgmr.msra.gmra.mrb[0].mxu1 %vm199_vm3, %v1447_v27  ;;  %v432_v33 = vpop.permute.xlu0 %431  ;;  %v443_v41 = vsel %vm203_vm2, %v436_v37, 0 }
  0x9c   : > { %1511 = vmatpush3.bf16.msra.mxu1 %v321_v31  ;;  %v437_v34 = vsel %vm435_vm4, %v430_v32, %v432_v33  ;;  %1512 = vmatprep.mubr.msk.bf16.mxu1 %vm1776_vm0, %v1774_v5 }
  0x9d   : > { %1455 = vmatprep.subr.msk.bf16.mxu0 %vm203_vm2, %v437_v34  ;;  %v434_v35 = vpop.permute.xlu1 %433  ;;  %1516 = vmatprep.subr.bf16.mxu1 %v1774_v5 }
  0x9e   : > { %v438_v39 = vsel %vm435_vm4, %v432_v33, %v434_v35 }
  0x9f   : > { %v559_v36 = vpop.permute.xlu0 %558  ;;  %v449_v44 = vsel %vm203_vm2, %v438_v39, 0  ;;  %v1478_v39 = vld [vmem:[%s2047_s0 + $0x20] sm:$0xf] }
  0xa1   : > { %v561_v38 = vpop.permute.xlu1 %560 }
  0xa2   : > { %v567_v47 = vsel %vm566_vm5, %v559_v36, %v561_v38  ;;  %v1474_v36 = vld [vmem:[%s2047_s0 + $0x1c] sm:$0xf] }
  0xa3   : > { %v563_v42 = vpop.permute.xlu0 %562  ;;  %v574_v52 = vsel %vm203_vm2, %v567_v47, 0 }
  0xa4   : > { %v568_v43 = vsel %vm566_vm5, %v561_v38, %v563_v42 }
  0xa5   : > { %1452 = vmatmul.mubr.msk.bf16.vlgmr.msra.gmra.mrb[0].mxu0 %vm199_vm3, %v162_v40  ;;  %v565_v46 = vpop.permute.xlu1 %564 }
  0xa6   : > { %452 = vmatpush1.bf16.msra.mxu0 %v443_v41  ;;  %483 = vmatprep.mubr.bf16.mxu0 %v1775_v6  ;;  %v569_v50 = vsel %vm566_vm5, %v563_v42, %v565_v46 }
  0xa7   : > { %1513 = vmatmul.mubr.msk.bf16.vlgmr.msra.gmra.mrb[0].mxu1 %vm199_vm3, %v162_v40  ;;  %1459 = vmatprep.subr.msk.bf16.mxu0 %vm203_vm2, %v568_v43  ;;  %v690_v45 = vpop.permute.xlu0 %689  ;;  %v580_v54 = vsel %vm203_vm2, %v569_v50, 0 }
  0xa8   : > { %1517 = vmatpush3.bf16.msra.mxu1 %v449_v44  ;;  %1518 = vmatprep.mubr.msk.bf16.mxu1 %vm1776_vm0, %v1774_v5 }
  0xa9   : > { %1522 = vmatprep.subr.bf16.mxu1 %v1774_v5  ;;  %v692_v48 = vpop.permute.xlu1 %691 }
  0xaa   : > { %v698_v57 = vsel %vm697_vm6, %v690_v45, %v692_v48 }
  0xab   : > { %v694_v49 = vpop.permute.xlu0 %693  ;;  %v705_v62 = vsel %vm203_vm2, %v698_v57, 0 }
  0xac   : > { %v699_v53 = vsel %vm697_vm6, %v692_v48, %v694_v49 }
  0xad   : > { %v696_v56 = vpop.permute.xlu1 %695 }
  0xae   : > { %v700_v60 = vsel %vm697_vm6, %v694_v49, %v696_v56 }
  0xaf   : > { %v821_v55 = vpop.permute.xlu0 %820  ;;  %v711_v0 = vsel %vm203_vm2, %v700_v60, 0 }
  0xb1   : > { %1456 = vmatmul.mubr.msk.bf16.vlgmr.msra.gmra.mrb[0].mxu0 %vm199_vm3, %v1454_v51  ;;  %v823_v58 = vpop.permute.xlu1 %822 }
  0xb2   : > { %583 = vmatpush1.bf16.msra.mxu0 %v574_v52  ;;  %614 = vmatprep.mubr.bf16.mxu0 %v1775_v6  ;;  %v829_v3 = vsel %vm828_vm7, %v821_v55, %v823_v58 }
  0xb3   : > { %1519 = vmatmul.mubr.msk.bf16.vlgmr.msra.gmra.mrb[0].mxu1 %vm199_vm3, %v1454_v51  ;;  %1463 = vmatprep.subr.msk.bf16.mxu0 %vm203_vm2, %v699_v53  ;;  %v825_v59 = vpop.permute.xlu0 %824  ;;  %v836_v10 = vsel %vm203_vm2, %v829_v3, 0 }
  0xb4   : > { %1523 = vmatpush3.bf16.msra.mxu1 %v580_v54  ;;  %1524 = vmatprep.mubr.msk.bf16.mxu1 %vm1776_vm0, %v1774_v5  ;;  %v830_v63 = vsel %vm828_vm7, %v823_v58, %v825_v59 }
  0xb5   : > { %1528 = vmatprep.subr.bf16.mxu1 %v1774_v5  ;;  %v827_v2 = vpop.permute.xlu1 %826 }
  0xb6   : > { %v831_v8 = vsel %vm828_vm7, %v825_v59, %v827_v2 }
  0xb7   : > { %v952_v1 = vpop.permute.xlu0 %951  ;;  %v842_v12 = vsel %vm203_vm2, %v831_v8, 0 }
  0xb9   : > { %v954_v4 = vpop.permute.xlu1 %953 }
  0xba   : > { %v960_v15 = vsel %vm959_vm8, %v952_v1, %v954_v4 }
  0xbb   : > { %v956_v7 = vpop.permute.xlu0 %955  ;;  %v967_v20 = vsel %vm203_vm2, %v960_v15, 0 }
  0xbc   : > { %v961_v11 = vsel %vm959_vm8, %v954_v4, %v956_v7 }
  0xbd   : > { %1460 = vmatmul.mubr.msk.bf16.vlgmr.msra.gmra.mrb[0].mxu0 %vm199_vm3, %v1458_v61  ;;  %v958_v14 = vpop.permute.xlu1 %957 }
  0xbe   : > { %714 = vmatpush1.bf16.msra.mxu0 %v705_v62  ;;  %745 = vmatprep.mubr.bf16.mxu0 %v1775_v6  ;;  %v962_v18 = vsel %vm959_vm8, %v956_v7, %v958_v14 }
  0xbf   : > { %1525 = vmatmul.mubr.msk.bf16.vlgmr.msra.gmra.mrb[0].mxu1 %vm199_vm3, %v1458_v61  ;;  %1467 = vmatprep.subr.msk.bf16.mxu0 %vm203_vm2, %v830_v63  ;;  %v1083_v13 = vpop.permute.xlu0 %1082  ;;  %v973_v22 = vsel %vm203_vm2, %v962_v18, 0 }
  0xc0   : > { %1529 = vmatpush3.bf16.msra.mxu1 %v711_v0  ;;  %1530 = vmatprep.mubr.msk.bf16.mxu1 %vm1776_vm0, %v1774_v5 }
  0xc1   : > { %1534 = vmatprep.subr.bf16.mxu1 %v1774_v5  ;;  %v1085_v16 = vpop.permute.xlu1 %1084 }
  0xc2   : > { %v1091_v25 = vsel %vm1090_vm9, %v1083_v13, %v1085_v16 }
  0xc3   : > { %v1087_v17 = vpop.permute.xlu0 %1086  ;;  %v1098_v30 = vsel %vm203_vm2, %v1091_v25, 0 }
  0xc4   : > { %v1092_v21 = vsel %vm1090_vm9, %v1085_v16, %v1087_v17 }
  0xc5   : > { %v1089_v24 = vpop.permute.xlu1 %1088 }
  0xc6   : > { %v1093_v28 = vsel %vm1090_vm9, %v1087_v17, %v1089_v24 }
  0xc7   : > { %v1214_v23 = vpop.permute.xlu0 %1213  ;;  %v1104_v32 = vsel %vm203_vm2, %v1093_v28, 0 }
  0xc9   : > { %1464 = vmatmul.mubr.msk.bf16.vlgmr.msra.gmra.mrb[0].mxu0 %vm199_vm3, %v1462_v9  ;;  %v1216_v26 = vpop.permute.xlu1 %1215 }
  0xca   : > { %845 = vmatpush1.bf16.msra.mxu0 %v836_v10  ;;  %876 = vmatprep.mubr.bf16.mxu0 %v1775_v6  ;;  %v1222_v34 = vsel %vm1221_vm10, %v1214_v23, %v1216_v26 }
  0xcb   : > { %1531 = vmatmul.mubr.msk.bf16.vlgmr.msra.gmra.mrb[0].mxu1 %vm199_vm3, %v1462_v9  ;;  %1471 = vmatprep.subr.msk.bf16.mxu0 %vm203_vm2, %v961_v11  ;;  %v1218_v27 = vpop.permute.xlu0 %1217  ;;  %v1229_v37 = vsel %vm203_vm2, %v1222_v34, 0 }
  0xcc   : > { %1535 = vmatpush3.bf16.msra.mxu1 %v842_v12  ;;  %1536 = vmatprep.mubr.msk.bf16.mxu1 %vm1776_vm0, %v1774_v5  ;;  %v1223_v31 = vsel %vm1221_vm10, %v1216_v26, %v1218_v27 }
  0xcd   : > { %1540 = vmatprep.subr.bf16.mxu1 %v1774_v5  ;;  %v1220_v33 = vpop.permute.xlu1 %1219 }
  0xce   : > { %v1224_v35 = vsel %vm1221_vm10, %v1218_v27, %v1220_v33 }
  0xcf   : > { %v1235_v38 = vsel %vm203_vm2, %v1224_v35, 0 }
  0xd5   : > { %1468 = vmatmul.mubr.msk.bf16.vlgmr.msra.gmra.mrb[0].mxu0 %vm199_vm3, %v1466_v19 }
  0xd6   : > { %976 = vmatpush1.bf16.msra.mxu0 %v967_v20  ;;  %1007 = vmatprep.mubr.bf16.mxu0 %v1775_v6 }
  0xd7   : > { %1537 = vmatmul.mubr.msk.bf16.vlgmr.msra.gmra.mrb[0].mxu1 %vm199_vm3, %v1466_v19  ;;  %1475 = vmatprep.subr.msk.bf16.mxu0 %vm203_vm2, %v1092_v21 }
  0xd8   : > { %1541 = vmatpush3.bf16.msra.mxu1 %v973_v22  ;;  %1542 = vmatprep.mubr.msk.bf16.mxu1 %vm1776_vm0, %v1774_v5 }
  0xd9   : > { %1546 = vmatprep.subr.bf16.mxu1 %v1774_v5 }
  0xe1   : > { %1472 = vmatmul.mubr.msk.bf16.vlgmr.msra.gmra.mrb[0].mxu0 %vm199_vm3, %v1470_v29 }
  0xe2   : > { %1107 = vmatpush1.bf16.msra.mxu0 %v1098_v30  ;;  %1138 = vmatprep.mubr.bf16.mxu0 %v1775_v6 }
  0xe3   : > { %1543 = vmatmul.mubr.msk.bf16.vlgmr.msra.gmra.mrb[0].mxu1 %vm199_vm3, %v1470_v29  ;;  %1479 = vmatprep.subr.msk.bf16.mxu0 %vm203_vm2, %v1223_v31 }
  0xe4   : > { %1547 = vmatpush3.bf16.msra.mxu1 %v1104_v32  ;;  %1548 = vmatprep.mubr.msk.bf16.mxu1 %vm1776_vm0, %v1774_v5 }
  0xe5   : > { %1552 = vmatprep.subr.bf16.mxu1 %v1774_v5 }
  0xed   : > { %1476 = vmatmul.mubr.msk.bf16.vlgmr.msra.gmra.mrb[0].mxu0 %vm199_vm3, %v1474_v36 }
  0xee   : > { %1238 = vmatpush1.bf16.msra.mxu0 %v1229_v37  ;;  %1269 = vmatprep.mubr.bf16.mxu0 %v1775_v6 }
  0xef   : > { %1549 = vmatmul.mubr.msk.bf16.vlgmr.msra.gmra.mrb[0].mxu1 %vm199_vm3, %v1474_v36 }
  0xf0   : > { %1553 = vmatpush3.bf16.msra.mxu1 %v1235_v38  ;;  %1554 = vmatprep.mubr.msk.bf16.mxu1 %vm1776_vm0, %v1774_v5 }
  0xf9   : > { %1480 = vmatmul.mubr.msk.bf16.vlgmr.msra.gmra.mrb[0].mxu0 %vm199_vm3, %v1478_v39 }
  0xfb   : > { %1555 = vmatmul.mubr.msk.bf16.vlgmr.msra.gmra.mrb[0].mxu1 %vm199_vm3, %v1478_v39 }
 0x1cc   : > { %v1271_v40 = vpop.f32.mrb[0].mxu0 }
 0x1cd   : > { %v1321_v6 = vmax.f32 %v1271_v40, 0.0  ;;  %v1273_v41 = vpop.f32.mrb[1].mxu0 }
 0x1ce   : > { %v1322_v42 = vmax.f32 %v1273_v41, 0.0  ;;  %v1275_v43 = vpop.f32.mrb[2].mxu0  ;;  %v1312_v5 = vpop.f32.mrb[0].mxu1 }
 0x1cf   : > { %1324 = vst [vmem:[%s150_s18] sm:$0xff] %v1321_v6  ;;  %v1323_v44 = vmax.f32 %v1312_v5, 0.0  ;;  %v1276_v45 = vpop.f32.mrb[3].mxu0  ;;  %v1556_v46 = vpop.f32.mrb[1].mxu1 }
 0x1d0   : > { %1325 = vst [vmem:[%s150_s18 + $0x8] sm:$0xff] %v1322_v42  ;;  %v1315_v47 = vpop.f32.mrb[2].mxu1 }
 0x1d1   : > { %1326 = vst [vmem:[%s150_s18 + $0x10] sm:$0xff] %v1323_v44  ;;  %v1557_v48 = vpop.f32.mrb[3].mxu1 }
 0x1d2   : > { %1706 = shalt.err (!%p1703_p5)
}
 0x1d3   : > { %s1707_s30 = scalar_lea.hbm %s2000_s25, 384  ;;  %s1711_s5 = scalar_lea.hbm %s2049_s2, 768 }
 0x1d4   : > { %p1708_p6 = scmp.ne.s32.totalorder %s2000_s25, %s1707_s30  ;;  %p1712_p10 = scmp.lt.u32.totalorder %s2000_s25, %s2049_s2 }
 0x1d5   : > { %p1713_p11 = scmp.lt.u32.totalorder %s1711_s5, %s1707_s30  ;;  %p1715_p13 = scmp.lt.u32.totalorder %s1707_s30, %s2000_s25 }
 0x1d6   : > { %p1709_p7 = pnand %p1708_p6, %p1841_p4 }
 0x1d7   : > { %p1714_p12 = por %p1713_p11, %p1712_p10 }
 0x1d8   : > { %p1710_p9 = pneg %p1709_p7 }
 0x1d9   : > { %p1716_p0 = por %p1715_p13, %p1714_p12 }
 0x1db   : > { %p1717_p1 = pnand %p1716_p0, %p1710_p9 }
 0x1dd   : > { %1720 = shalt.err (!%p1717_p1)
}
 0x1de   : > { %1624 = dma.vmem_to_hbm [thread:$0]  (%p1841_p4), %s2002_s20, 384, %s2000_s25, %s1328_s12  }
 0x1df PF: > { %p1630_p2 = scmp.ge.s32.totalorder %s1771_s14, 2  ;;  %s1356_s8 = sand.u32 1, %s1751_s9  }
 0x1e0   : > { %s1357_s15 = scalar_lea.sflag [#allocation3], %s1356_s8 }
 0x1e1   : > { %p1627_p3 = pnand %p1630_p2, %p1848_p8 }
 0x1e3   : > { %1746 = dma.done.wait (!%p1627_p3), %s1357_s15, 384  }
 0x1e4   : > { %1748 = vsyncadd (!%p1627_p3), %s1357_s15, 4294966912  ;;  %s15_s14 = sadd.s32 1, %s1771_s14   ;;  %s2052_s9 = smov %s1755_s10 }
 0x1e5   : > { %p12_p5 = scmp.ge.s32.totalorder %s15_s14, 4   ;;  %s2053_s10 = smov %s1759_s11 }
 0x1e6   : > { %s2054_s11 = smov %s1854_s22  ;;  %s2055_s12 = smov %s1767_s13 }
 0x1e7   : > { %s2056_s13 = smov %s2058_s17  ;;  %14 = sbr.rel (!%p12_p5) target bundleno = 4 (0x4), region = 72 }
 0x1ee   :  { %1362 = vsyncpa [#allocation3], 1 }
 0x1ef   :  { %1364 = vsyncpa [#allocation3 + $0x1], 1 }

</bundles_post_ra>
